<compile_context>
chip_gen: v5e
topology: v5e:2x2
jax: 0.10.0
libtpu: 0.0.40
codegen_flags: <defaults>
</compile_context>

<pallas_src>
import jax
import jax.numpy as jnp
from jax.experimental import pallas as pl
from jax.experimental.pallas import tpu as pltpu


def attention_fusion_kernel(
    mol_ref, cond_ref,        # (TB, mol_dim) / (TB, cond_dim), bf16
    wm_ref,                   # (mol_dim, D) bf16             -- residual branch
    wqkv_m_ref,               # (mol_dim, 3D) bf16 = Wm @ [Wq|Wk|Wv]  (folded)
    wqkv_c_ref,               # (cond_dim, 3D) bf16 = Wc @ [Wq|Wk|Wv] (folded)
    wo_ref,                   # (D, D) bf16
    bqkv_ref,                 # (2, 3D) f32: folded QKV bias [mol row; cond row]
    bvec_ref,                 # (4, D)  f32: [bm, bo, gamma, beta]
    out_ref):                 # (TB, D)
  f32 = jnp.float32
  bf16 = jnp.bfloat16

  mol = mol_ref[...]
  cond = cond_ref[...]

  bvec = bvec_ref[...]
  bm, bo = bvec[0:1, :], bvec[1:2, :]
  gamma, beta = bvec[2:3, :], bvec[3:4, :]
  bqkv = bqkv_ref[...]

  D = wo_ref.shape[0]
  scale = 1.0 / (float(D) ** 0.5)

  # Residual branch: mol_feat = mol @ Wm + bm (needed for residual + LayerNorm).
  mol_feat = jnp.dot(mol, wm_ref[...], preferred_element_type=f32) + bm   # (TB, D)

  # Folded QKV projections (input projections folded into the weights in the
  # wrapper) -> one matmul per token stream, no concatenate / recast.
  qkv_m = jnp.dot(mol, wqkv_m_ref[...], preferred_element_type=f32) + bqkv[0:1, :]
  qkv_c = jnp.dot(cond, wqkv_c_ref[...], preferred_element_type=f32) + bqkv[1:2, :]

  q0, k0, v0 = qkv_m[:, 0:D], qkv_m[:, D:2 * D], qkv_m[:, 2 * D:3 * D]
  q1, k1, v1 = qkv_c[:, 0:D], qkv_c[:, D:2 * D], qkv_c[:, 2 * D:3 * D]

  # Two-element softmax == sigmoid of the score difference:
  #   w_i0 = softmax([s_i0, s_i1])[0] = sigmoid((q_i . (k0 - k1)) * scale)
  dk = k0 - k1
  d0 = jnp.sum(q0 * dk, axis=-1, keepdims=True) * scale     # (TB, 1)
  d1 = jnp.sum(q1 * dk, axis=-1, keepdims=True) * scale     # (TB, 1)

  def stable_sigmoid(x):
    z = jnp.exp(-jnp.abs(x))                    # EUP
    inv = pl.reciprocal(1.0 + z, approx=True)   # EUP
    return jnp.where(x >= 0, inv, z * inv)

  c0 = stable_sigmoid(d0) + stable_sigmoid(d1)   # (TB, 1); c1 = 2 - c0 exactly
  fused = 2.0 * v1 + c0 * (v0 - v1)              # (TB, D) f32

  # Output projection + residual (with mol_feat) + LayerNorm(eps=1e-5).
  out = jnp.dot(fused.astype(bf16), wo_ref[...], preferred_element_type=f32) + bo
  resid = out + mol_feat
  mean = jnp.mean(resid, axis=-1, keepdims=True)
  centered = resid - mean
  var = jnp.mean(centered * centered, axis=-1, keepdims=True)
  normed = centered * jax.lax.rsqrt(var + 1e-5)
  out_ref[...] = (normed * gamma + beta).astype(out_ref.dtype)


def prepare_fusion_params(params):
  """One-time weight folding / packing / bf16 casting. Cache across calls."""
  f32, bf16 = jnp.float32, jnp.bfloat16
  wqkv = jnp.concatenate([params["wq"], params["wk"], params["wv"]], axis=1)   # (D, 3D)
  bqkv = jnp.concatenate([params["bq"], params["bk"], params["bv"]], axis=1)   # (1, 3D)
  # Fold the input projections into the QKV weights (f32 fold, single bf16 cast).
  wqkv_m = params["wm"].astype(f32) @ wqkv                                     # (mol_dim, 3D)
  wqkv_c = params["wc"].astype(f32) @ wqkv                                     # (cond_dim, 3D)
  bqkv_m = params["bm"].astype(f32) @ wqkv + bqkv                              # (1, 3D)
  bqkv_c = params["bc"].astype(f32) @ wqkv + bqkv                              # (1, 3D)
  return {
      "wm": params["wm"].astype(bf16),
      "wqkv_m": wqkv_m.astype(bf16),
      "wqkv_c": wqkv_c.astype(bf16),
      "wo": params["wo"].astype(bf16),
      "bqkv": jnp.concatenate([bqkv_m, bqkv_c], axis=0).astype(f32),           # (2, 3D)
      "bvec": jnp.concatenate([params["bm"], params["bo"],
                               params["gamma"], params["beta"]],
                              axis=0).astype(f32),                              # (4, D)
  }


def _pick_tile_b(B, mol_dim, cond_dim, D, out_bytes, vmem_budget_bytes=24 << 20):
  """Largest multiple-of-8 divisor of B that (a) keeps the per-step VMEM
  footprint under budget and (b) leaves >= 2 grid steps when B >= 16 (so both
  v7x TensorCores get a step under dimension_semantics=('parallel',))."""
  # Single-buffered bf16 weights + f32 bias packs come off the top of the budget.
  weight_bytes = 2 * (mol_dim * D + mol_dim * 3 * D + cond_dim * 3 * D + D * D) \
      + 4 * (2 * 3 * D + 4 * D)
  budget = max(vmem_budget_bytes - weight_bytes, 1 << 20)
  # Per-row: double-buffered bf16 inputs + double-buffered output
  # + ~12 live f32 (row, D) intermediates (mol_feat, qkv_m/qkv_c, fused, LN chain).
  per_row = 2 * 2 * (mol_dim + cond_dim) + 2 * out_bytes * D + 12 * 4 * D
  row_cap = max(8, budget // max(per_row, 1))
  limit = min(row_cap, B // 2 if B >= 16 else B)
  best = None
  t = 8
  while t <= limit:
    if B % t == 0:
      best = t
    t += 8
  return best if best is not None else B


def attention_fusion(mol_repr, cond_repr, prepped, *, tile_b=None,
                     out_dtype=jnp.bfloat16, vmem_limit_bytes=None):
  B, mol_dim = mol_repr.shape
  B2, cond_dim = cond_repr.shape
  assert B == B2
  D = prepped["wo"].shape[0]

  if tile_b is None:
    tile_b = _pick_tile_b(B, mol_dim, cond_dim, D,
                          out_bytes=jnp.dtype(out_dtype).itemsize)
  assert B % tile_b == 0, "batch must be divisible by tile_b"
  assert tile_b == B or tile_b % 8 == 0, "tile_b must be a multiple of 8"

  bf16 = jnp.bfloat16
  mol_bf = mol_repr.astype(bf16)
  cond_bf = cond_repr.astype(bf16)

  def batch_spec(cols):
    return pl.BlockSpec((tile_b, cols), lambda i: (i, 0))

  def const_spec(shape):
    # Grid-invariant operand: single-buffer it (halves constant-weight VMEM).
    try:
      return pl.BlockSpec(shape, lambda i: (0, 0), pipeline_mode=pl.Buffered(1))
    except (TypeError, AttributeError):   # older jax without pipeline_mode
      return pl.BlockSpec(shape, lambda i: (0, 0))

  grid_spec = pltpu.PrefetchScalarGridSpec(
      num_scalar_prefetch=0,
      grid=(B // tile_b,),
      in_specs=[
          batch_spec(mol_dim),               # mol
          batch_spec(cond_dim),              # cond
          const_spec((mol_dim, D)),          # wm (residual branch)
          const_spec((mol_dim, 3 * D)),      # folded wqkv_mol
          const_spec((cond_dim, 3 * D)),     # folded wqkv_cond
          const_spec((D, D)),                # wo
          const_spec((2, 3 * D)),            # folded qkv biases
          const_spec((4, D)),                # bm / bo / gamma / beta
      ],
      out_specs=pl.BlockSpec((tile_b, D), lambda i: (i, 0)),
  )

  fn = pl.pallas_call(
      attention_fusion_kernel,
      out_shape=jax.ShapeDtypeStruct((B, D), out_dtype),
      grid_spec=grid_spec,
      compiler_params=pltpu.CompilerParams(
          dimension_semantics=("parallel",),
          vmem_limit_bytes=vmem_limit_bytes),
  )
  return fn(mol_bf, cond_bf, prepped["wm"], prepped["wqkv_m"], prepped["wqkv_c"],
            prepped["wo"], prepped["bqkv"], prepped["bvec"])


def reference_attention_fusion(mol_repr, cond_repr, params):
  """Pure-JAX f32 reference mirroring the PyTorch forward."""
  mol_feat = mol_repr @ params["wm"] + params["bm"]
  cond_feat = cond_repr @ params["wc"] + params["bc"]
  combined = jnp.stack([mol_feat, cond_feat], axis=1)        # (B, 2, D)
  q = combined @ params["wq"] + params["bq"]
  k = combined @ params["wk"] + params["bk"]
  v = combined @ params["wv"] + params["bv"]
  scores = jnp.einsum("bid,bjd->bij", q, k) / (combined.shape[-1] ** 0.5)
  attn = jax.nn.softmax(scores, axis=-1)
  attn_out = jnp.einsum("bij,bjd->bid", attn, v)
  fused = attn_out.sum(axis=1)
  out = fused @ params["wo"] + params["bo"]
  resid = out + mol_feat
  mean = jnp.mean(resid, axis=-1, keepdims=True)
  var = jnp.mean((resid - mean) ** 2, axis=-1, keepdims=True)
  return (resid - mean) * jax.lax.rsqrt(var + 1e-5) * params["gamma"] + params["beta"]


def init_params(key, mol_dim, cond_dim, output_dim):
  """Deterministic synthetic params. Weights stored as [in, out] (pre-transposed)."""
  ks = jax.random.split(key, 12)
  def w(k, fan_in, fan_out):
    bound = 1.0 / (fan_in ** 0.5)
    return jax.random.uniform(k, (fan_in, fan_out), jnp.float32, -bound, bound)
  def b(k, fan_in, fan_out):
    bound = 1.0 / (fan_in ** 0.5)
    return jax.random.uniform(k, (1, fan_out), jnp.float32, -bound, bound)
  D = output_dim
  return {
      "wm": w(ks[0], mol_dim, D),  "bm": b(ks[1], mol_dim, D),
      "wc": w(ks[2], cond_dim, D), "bc": b(ks[3], cond_dim, D),
      "wq": w(ks[4], D, D),        "bq": b(ks[5], D, D),
      "wk": w(ks[6], D, D),        "bk": b(ks[7], D, D),
      "wv": w(ks[8], D, D),        "bv": b(ks[9], D, D),
      "wo": w(ks[10], D, D),       "bo": b(ks[11], D, D),
      "gamma": jnp.ones((1, D), jnp.float32),
      "beta": jnp.zeros((1, D), jnp.float32),
  }


if __name__ == "__main__":
  B, MOL_DIM, COND_DIM, OUT_DIM = 64, 64, 32, 128

  key = jax.random.PRNGKey(0)
  k_mol, k_cond, k_params = jax.random.split(key, 3)
  mol_repr = jax.random.normal(k_mol, (B, MOL_DIM), jnp.float32)
  cond_repr = jax.random.normal(k_cond, (B, COND_DIM), jnp.float32)
  params = init_params(k_params, MOL_DIM, COND_DIM, OUT_DIM)

  # One-time weight folding / packing (cached across calls in a real model).
  prepped = prepare_fusion_params(params)

  # Auto tile_b: B=64 -> tile_b=32, grid=(2,) so both v7x TensorCores get work.
  out = attention_fusion(mol_repr, cond_repr, prepped)
  out = jax.block_until_ready(out)

  ref = reference_attention_fusion(mol_repr, cond_repr, params)
  assert out.shape == (B, OUT_DIM)
  # bf16 folded weights + bf16 matmuls + approx recip + bf16 output vs f32 ref.
  assert jnp.allclose(out.astype(jnp.float32), ref, rtol=6e-2, atol=6e-2), \
      "mismatch vs JAX reference"

  print("KERNEL_OK")
</pallas_src>

<mosaic_0001>
module attributes {stable_mosaic.version = 11 : i64} {
  func.func @attention_fusion_kernel(%arg0: i32, %arg1: memref<32x64xbf16, #tpu.memory_space<vmem>>, %arg2: memref<32x32xbf16, #tpu.memory_space<vmem>>, %arg3: memref<64x128xbf16, #tpu.memory_space<vmem>>, %arg4: memref<64x384xbf16, #tpu.memory_space<vmem>>, %arg5: memref<32x384xbf16, #tpu.memory_space<vmem>>, %arg6: memref<128x128xbf16, #tpu.memory_space<vmem>>, %arg7: memref<2x384xf32, #tpu.memory_space<vmem>>, %arg8: memref<4x128xf32, #tpu.memory_space<vmem>>, %arg9: memref<32x128xbf16, #tpu.memory_space<vmem>>) attributes {dimension_semantics = [#tpu.dimension_semantics<parallel>], iteration_bounds = array<i64: 2>, scalar_prefetch = 0 : i64, scratch_operands = 0 : i64, tpu.core_type = #tpu.core_type<tc>, window_params = [{transform_indices = @transform_0, window_bounds = array<i64: 32, 64>}, {transform_indices = @transform_1, window_bounds = array<i64: 32, 32>}, {pipeline_mode = #tpu.pipeline_mode<synchronous>, transform_indices = @transform_2, window_bounds = array<i64: 64, 128>}, {pipeline_mode = #tpu.pipeline_mode<synchronous>, transform_indices = @transform_3, window_bounds = array<i64: 64, 384>}, {pipeline_mode = #tpu.pipeline_mode<synchronous>, transform_indices = @transform_4, window_bounds = array<i64: 32, 384>}, {pipeline_mode = #tpu.pipeline_mode<synchronous>, transform_indices = @transform_5, window_bounds = array<i64: 128, 128>}, {pipeline_mode = #tpu.pipeline_mode<synchronous>, transform_indices = @transform_6, window_bounds = array<i64: 2, 384>}, {pipeline_mode = #tpu.pipeline_mode<synchronous>, transform_indices = @transform_7, window_bounds = array<i64: 4, 128>}, {transform_indices = @transform_8, window_bounds = array<i64: 32, 128>}]} {
    %c0 = arith.constant 0 : index
    %c0_0 = arith.constant 0 : index
    %0 = vector.load %arg1[%c0, %c0_0] : memref<32x64xbf16, #tpu.memory_space<vmem>>, vector<32x64xbf16>
    %c0_1 = arith.constant 0 : index
    %c0_2 = arith.constant 0 : index
    %1 = vector.load %arg2[%c0_1, %c0_2] : memref<32x32xbf16, #tpu.memory_space<vmem>>, vector<32x32xbf16>
    %c0_3 = arith.constant 0 : index
    %c0_4 = arith.constant 0 : index
    %2 = vector.load %arg8[%c0_3, %c0_4] : memref<4x128xf32, #tpu.memory_space<vmem>>, vector<4x128xf32>
    %3 = vector.extract_strided_slice %2 {offsets = [0, 0], sizes = [1, 128], strides = [1, 1]} : vector<4x128xf32> to vector<1x128xf32>
    %4 = vector.extract_strided_slice %2 {offsets = [1, 0], sizes = [1, 128], strides = [1, 1]} : vector<4x128xf32> to vector<1x128xf32>
    %5 = vector.extract_strided_slice %2 {offsets = [2, 0], sizes = [1, 128], strides = [1, 1]} : vector<4x128xf32> to vector<1x128xf32>
    %6 = vector.extract_strided_slice %2 {offsets = [3, 0], sizes = [1, 128], strides = [1, 1]} : vector<4x128xf32> to vector<1x128xf32>
    %c0_5 = arith.constant 0 : index
    %c0_6 = arith.constant 0 : index
    %7 = vector.load %arg7[%c0_5, %c0_6] : memref<2x384xf32, #tpu.memory_space<vmem>>, vector<2x384xf32>
    %c0_7 = arith.constant 0 : index
    %c0_8 = arith.constant 0 : index
    %8 = vector.load %arg3[%c0_7, %c0_8] : memref<64x128xbf16, #tpu.memory_space<vmem>>, vector<64x128xbf16>
    %cst = arith.constant dense<0.000000e+00> : vector<32x128xf32>
    %9 = tpu.matmul %0, %8, %cst {dimension_numbers = #tpu.dot_dimension_numbers<[1], [0], [0], [1], [0, 0, 1, 1], [], []>} : vector<32x64xbf16>, vector<64x128xbf16>, vector<32x128xf32> -> vector<32x128xf32>
    %10 = vector.broadcast %3 : vector<1x128xf32> to vector<32x128xf32>
    %11 = arith.addf %9, %10 : vector<32x128xf32>
    %c0_9 = arith.constant 0 : index
    %c0_10 = arith.constant 0 : index
    %12 = vector.load %arg4[%c0_9, %c0_10] : memref<64x384xbf16, #tpu.memory_space<vmem>>, vector<64x384xbf16>
    %cst_11 = arith.constant dense<0.000000e+00> : vector<32x384xf32>
    %13 = tpu.matmul %0, %12, %cst_11 {dimension_numbers = #tpu.dot_dimension_numbers<[1], [0], [0], [1], [0, 0, 1, 1], [], []>} : vector<32x64xbf16>, vector<64x384xbf16>, vector<32x384xf32> -> vector<32x384xf32>
    %14 = vector.extract_strided_slice %7 {offsets = [0, 0], sizes = [1, 384], strides = [1, 1]} : vector<2x384xf32> to vector<1x384xf32>
    %15 = vector.broadcast %14 : vector<1x384xf32> to vector<32x384xf32>
    %16 = arith.addf %13, %15 : vector<32x384xf32>
    %c0_12 = arith.constant 0 : index
    %c0_13 = arith.constant 0 : index
    %17 = vector.load %arg5[%c0_12, %c0_13] : memref<32x384xbf16, #tpu.memory_space<vmem>>, vector<32x384xbf16>
    %cst_14 = arith.constant dense<0.000000e+00> : vector<32x384xf32>
    %18 = tpu.matmul %1, %17, %cst_14 {dimension_numbers = #tpu.dot_dimension_numbers<[1], [0], [0], [1], [0, 0, 1, 1], [], []>} : vector<32x32xbf16>, vector<32x384xbf16>, vector<32x384xf32> -> vector<32x384xf32>
    %19 = vector.extract_strided_slice %7 {offsets = [1, 0], sizes = [1, 384], strides = [1, 1]} : vector<2x384xf32> to vector<1x384xf32>
    %20 = vector.broadcast %19 : vector<1x384xf32> to vector<32x384xf32>
    %21 = arith.addf %18, %20 : vector<32x384xf32>
    %22 = vector.extract_strided_slice %16 {offsets = [0, 0], sizes = [32, 128], strides = [1, 1]} : vector<32x384xf32> to vector<32x128xf32>
    %23 = vector.extract_strided_slice %16 {offsets = [0, 128], sizes = [32, 128], strides = [1, 1]} : vector<32x384xf32> to vector<32x128xf32>
    %24 = vector.extract_strided_slice %16 {offsets = [0, 256], sizes = [32, 128], strides = [1, 1]} : vector<32x384xf32> to vector<32x128xf32>
    %25 = vector.extract_strided_slice %21 {offsets = [0, 0], sizes = [32, 128], strides = [1, 1]} : vector<32x384xf32> to vector<32x128xf32>
    %26 = vector.extract_strided_slice %21 {offsets = [0, 128], sizes = [32, 128], strides = [1, 1]} : vector<32x384xf32> to vector<32x128xf32>
    %27 = vector.extract_strided_slice %21 {offsets = [0, 256], sizes = [32, 128], strides = [1, 1]} : vector<32x384xf32> to vector<32x128xf32>
    %28 = arith.subf %23, %26 : vector<32x128xf32>
    %29 = arith.mulf %22, %28 : vector<32x128xf32>
    %cst_15 = arith.constant dense<0.000000e+00> : vector<32xf32>
    %30 = vector.multi_reduction <add>, %29, %cst_15 [1] : vector<32x128xf32> to vector<32xf32>
    %31 = vector.shape_cast %30 : vector<32xf32> to vector<32x1xf32>
    %cst_16 = arith.constant 0.0883883461 : f32
    %32 = vector.broadcast %cst_16 : f32 to vector<32x1xf32>
    %33 = arith.mulf %31, %32 : vector<32x1xf32>
    %34 = arith.mulf %25, %28 : vector<32x128xf32>
    %cst_17 = arith.constant dense<0.000000e+00> : vector<32xf32>
    %35 = vector.multi_reduction <add>, %34, %cst_17 [1] : vector<32x128xf32> to vector<32xf32>
    %36 = vector.shape_cast %35 : vector<32xf32> to vector<32x1xf32>
    %cst_18 = arith.constant 0.0883883461 : f32
    %37 = vector.broadcast %cst_18 : f32 to vector<32x1xf32>
    %38 = arith.mulf %36, %37 : vector<32x1xf32>
    %39 = math.absf %33 : vector<32x1xf32>
    %cst_19 = arith.constant 0.000000e+00 : f32
    %40 = vector.broadcast %cst_19 : f32 to vector<32x1xf32>
    %41 = arith.subf %40, %39 : vector<32x1xf32>
    %42 = math.exp %41 : vector<32x1xf32>
    %cst_20 = arith.constant 1.000000e+00 : f32
    %43 = vector.broadcast %cst_20 : f32 to vector<32x1xf32>
    %44 = arith.addf %43, %42 : vector<32x1xf32>
    %45 = tpu.reciprocal %44 {approx = true} : vector<32x1xf32> -> vector<32x1xf32>
    %cst_21 = arith.constant 0.000000e+00 : f32
    %46 = vector.broadcast %cst_21 : f32 to vector<32x1xf32>
    %47 = arith.cmpf oge, %33, %46 : vector<32x1xf32>
    %48 = arith.mulf %42, %45 : vector<32x1xf32>
    %49 = arith.select %47, %45, %48 : vector<32x1xi1>, vector<32x1xf32>
    %50 = math.absf %38 : vector<32x1xf32>
    %cst_22 = arith.constant 0.000000e+00 : f32
    %51 = vector.broadcast %cst_22 : f32 to vector<32x1xf32>
    %52 = arith.subf %51, %50 : vector<32x1xf32>
    %53 = math.exp %52 : vector<32x1xf32>
    %cst_23 = arith.constant 1.000000e+00 : f32
    %54 = vector.broadcast %cst_23 : f32 to vector<32x1xf32>
    %55 = arith.addf %54, %53 : vector<32x1xf32>
    %56 = tpu.reciprocal %55 {approx = true} : vector<32x1xf32> -> vector<32x1xf32>
    %cst_24 = arith.constant 0.000000e+00 : f32
    %57 = vector.broadcast %cst_24 : f32 to vector<32x1xf32>
    %58 = arith.cmpf oge, %38, %57 : vector<32x1xf32>
    %59 = arith.mulf %53, %56 : vector<32x1xf32>
    %60 = arith.select %58, %56, %59 : vector<32x1xi1>, vector<32x1xf32>
    %61 = arith.addf %49, %60 : vector<32x1xf32>
    %cst_25 = arith.constant 2.000000e+00 : f32
    %62 = vector.broadcast %cst_25 : f32 to vector<32x128xf32>
    %63 = arith.mulf %62, %27 : vector<32x128xf32>
    %64 = arith.subf %24, %27 : vector<32x128xf32>
    %65 = vector.broadcast %61 : vector<32x1xf32> to vector<32x128xf32>
    %66 = arith.mulf %65, %64 : vector<32x128xf32>
    %67 = arith.addf %63, %66 : vector<32x128xf32>
    %68 = arith.truncf %67 : vector<32x128xf32> to vector<32x128xbf16>
    %c0_26 = arith.constant 0 : index
    %c0_27 = arith.constant 0 : index
    %69 = vector.load %arg6[%c0_26, %c0_27] : memref<128x128xbf16, #tpu.memory_space<vmem>>, vector<128x128xbf16>
    %cst_28 = arith.constant dense<0.000000e+00> : vector<32x128xf32>
    %70 = tpu.matmul %68, %69, %cst_28 {dimension_numbers = #tpu.dot_dimension_numbers<[1], [0], [0], [1], [0, 0, 1, 1], [], []>} : vector<32x128xbf16>, vector<128x128xbf16>, vector<32x128xf32> -> vector<32x128xf32>
    %71 = vector.broadcast %4 : vector<1x128xf32> to vector<32x128xf32>
    %72 = arith.addf %70, %71 : vector<32x128xf32>
    %73 = arith.addf %72, %11 : vector<32x128xf32>
    %cst_29 = arith.constant dense<0.000000e+00> : vector<32xf32>
    %74 = vector.multi_reduction <add>, %73, %cst_29 [1] : vector<32x128xf32> to vector<32xf32>
    %75 = vector.shape_cast %74 : vector<32xf32> to vector<32x1xf32>
    %cst_30 = arith.constant 1.280000e+02 : f32
    %76 = vector.broadcast %cst_30 : f32 to vector<32x1xf32>
    %77 = arith.divf %75, %76 : vector<32x1xf32>
    %78 = vector.broadcast %77 : vector<32x1xf32> to vector<32x128xf32>
    %79 = arith.subf %73, %78 : vector<32x128xf32>
    %80 = arith.mulf %79, %79 : vector<32x128xf32>
    %cst_31 = arith.constant dense<0.000000e+00> : vector<32xf32>
    %81 = vector.multi_reduction <add>, %80, %cst_31 [1] : vector<32x128xf32> to vector<32xf32>
    %82 = vector.shape_cast %81 : vector<32xf32> to vector<32x1xf32>
    %cst_32 = arith.constant 1.280000e+02 : f32
    %83 = vector.broadcast %cst_32 : f32 to vector<32x1xf32>
    %84 = arith.divf %82, %83 : vector<32x1xf32>
    %cst_33 = arith.constant 9.99999974E-6 : f32
    %85 = vector.broadcast %cst_33 : f32 to vector<32x1xf32>
    %86 = arith.addf %84, %85 : vector<32x1xf32>
    %87 = math.rsqrt %86 : vector<32x1xf32>
    %88 = vector.broadcast %87 : vector<32x1xf32> to vector<32x128xf32>
    %89 = arith.mulf %79, %88 : vector<32x128xf32>
    %90 = vector.broadcast %5 : vector<1x128xf32> to vector<32x128xf32>
    %91 = arith.mulf %89, %90 : vector<32x128xf32>
    %92 = vector.broadcast %6 : vector<1x128xf32> to vector<32x128xf32>
    %93 = arith.addf %91, %92 : vector<32x128xf32>
    %94 = arith.truncf %93 : vector<32x128xf32> to vector<32x128xbf16>
    %c0_34 = arith.constant 0 : index
    %c0_35 = arith.constant 0 : index
    %95 = vector.load %arg9[%c0_34, %c0_35] : memref<32x128xbf16, #tpu.memory_space<vmem>>, vector<32x128xbf16>
    tpu.vector_store %arg9[%c0_34, %c0_35], %94 {strides = array<i32>} : memref<32x128xbf16, #tpu.memory_space<vmem>>, vector<32x128xbf16>,
    return
  }
  func.func @transform_0(%arg0: i32) -> (i32, i32) {
    %c0_i32 = arith.constant 0 : i32
    %c0_i32_0 = arith.constant 0 : i32
    return %arg0, %c0_i32 : i32, i32
  }
  func.func @transform_1(%arg0: i32) -> (i32, i32) {
    %c0_i32 = arith.constant 0 : i32
    %c0_i32_0 = arith.constant 0 : i32
    return %arg0, %c0_i32 : i32, i32
  }
  func.func @transform_2(%arg0: i32) -> (i32, i32) {
    %c0_i32 = arith.constant 0 : i32
    %c0_i32_0 = arith.constant 0 : i32
    %c0_i32_1 = arith.constant 0 : i32
    return %c0_i32, %c0_i32_0 : i32, i32
  }
  func.func @transform_3(%arg0: i32) -> (i32, i32) {
    %c0_i32 = arith.constant 0 : i32
    %c0_i32_0 = arith.constant 0 : i32
    %c0_i32_1 = arith.constant 0 : i32
    return %c0_i32, %c0_i32_0 : i32, i32
  }
  func.func @transform_4(%arg0: i32) -> (i32, i32) {
    %c0_i32 = arith.constant 0 : i32
    %c0_i32_0 = arith.constant 0 : i32
    %c0_i32_1 = arith.constant 0 : i32
    return %c0_i32, %c0_i32_0 : i32, i32
  }
  func.func @transform_5(%arg0: i32) -> (i32, i32) {
    %c0_i32 = arith.constant 0 : i32
    %c0_i32_0 = arith.constant 0 : i32
    %c0_i32_1 = arith.constant 0 : i32
    return %c0_i32, %c0_i32_0 : i32, i32
  }
  func.func @transform_6(%arg0: i32) -> (i32, i32) {
    %c0_i32 = arith.constant 0 : i32
    %c0_i32_0 = arith.constant 0 : i32
    %c0_i32_1 = arith.constant 0 : i32
    return %c0_i32, %c0_i32_0 : i32, i32
  }
  func.func @transform_7(%arg0: i32) -> (i32, i32) {
    %c0_i32 = arith.constant 0 : i32
    %c0_i32_0 = arith.constant 0 : i32
    %c0_i32_1 = arith.constant 0 : i32
    return %c0_i32, %c0_i32_0 : i32, i32
  }
  func.func @transform_8(%arg0: i32) -> (i32, i32) {
    %c0_i32 = arith.constant 0 : i32
    %c0_i32_0 = arith.constant 0 : i32
    return %arg0, %c0_i32 : i32, i32
  }
}

</mosaic_0001>

<bundles_post_ra>
// kernel: tpu_custom_call.1
= control target key start
LH: loop header
LB: loop body
LE: loop exit
PB: predicated region body
PF: predicated region fallthrough
CT: control target
= control target key end

     0   :  { %s2188_s0 = inlined_call_operand.hbm [shape: bf16[64,64], index: 0, kind: input, shape index: {}]   ;;  %s2189_s1 = inlined_call_operand.vmem [shape: bf16[64,32], index: 1, kind: input, shape index: {}]   ;;  %s2190_s2 = inlined_call_operand.hbm [shape: bf16[64,128], index: 2, kind: input, shape index: {}]   ;;  %s2191_s3 = inlined_call_operand.hbm [shape: bf16[64,384], index: 3, kind: input, shape index: {}]   ;;  %s2192_s4 = inlined_call_operand.vmem [shape: bf16[32,384], index: 4, kind: input, shape index: {}]   ;;  %s2193_s5 = inlined_call_operand.hbm [shape: bf16[128,128], index: 5, kind: input, shape index: {}]   ;;  %s2194_s6 = inlined_call_operand.hbm [shape: f32[2,384], index: 6, kind: input, shape index: {}]   ;;  %s2195_s7 = inlined_call_operand.vmem [shape: f32[4,128], index: 7, kind: input, shape index: {}]   ;;  %s2196_s8 = inlined_call_operand.hbm [shape: bf16[64,128], index: 8, kind: output, shape index: {}]  }
   0x1   :  { %2199 = sst [smem:[#allocation16_spill]] %s2190_s2 }
   0x2   :  { %2200 = sst [smem:[#allocation17_spill]] %s2191_s3 }
   0x3   :  { %13 = vsyncpa [#allocation3], 0 }
   0x4   :  { %15 = vsyncpa [#allocation3 + $0x1], 0 }
   0x5   :  { %16 = vsyncpa [#allocation6], 0 }
   0x6   :  { %17 = vsyncpa [#allocation9], 0 }
   0x7   :  { %18 = vsyncpa [#allocation4], 0 }
   0x8   :  { %20 = vsyncpa [#allocation4 + $0x1], 0  ;;  %s1865_s27 = smov 0   ;;  %s1867_s28 = smov 0  }
   0x9   :  { %s1869_s29 = smov 0   ;;  %s1871_s30 = smov 0  }
   0xa LB: > { %s1886_s9 = sadd.s32 4294967295, %s1807_s30   ;;  %s1226_s10 = sadd.s32 4294967294, %s1807_s30   ;;  %s1807_s30 = sphi %s1871_s30, %s2215_s30   ;;  %s1803_s29 = sphi %s1869_s29, %s2214_s29   ;;  %s1799_s28 = sphi %s1867_s28, %s2213_s28   ;;  %s1795_s27 = sphi %s1865_s27, %s2212_s27  }
   0xb   : > { %p46_p0 = scmp.ne.s32.totalorder %s1799_s28, %s1795_s27  ;;  %p47_p1 = scmp.eq.s32.totalorder %s1886_s9, 0 }
   0xc   : > { %p222_p2 = scmp.eq.s32.totalorder %s1886_s9, 1  ;;  %p228_p3 = scmp.eq.s32.totalorder %s1226_s10, 1 }
   0xd   : > { %p1895_p4 = por %p47_p1, %p46_p0  ;;  %p1227_p5 = scmp.ge.s32.totalorder %s1807_s30, 1 }
   0xe   : > { %p1900_p6 = por %p228_p3, %p46_p0  ;;  %p235_p7 = scmp.lt.s32.totalorder %s1807_s30, 3 }
   0xf   : > { %s2203_s2 = sld [smem:[#allocation16_spill]]  ;;  %s1809_s17 = smov [#allocation5]  }
  0x10   : > { %p1908_p8 = pnand %p1227_p5, %p235_p7  ;;  %s248_s18 = sshll.u32 %s1809_s17, 4  ;;  %s249_s18 = int_to_ptr.vmem [resolvable:$true] %s248_s18 }
  0x11   : > { %s277_s22 = sshll.u32 %s2193_s5, 4  ;;  %s2197_s23 = smov 64   ;;  %s278_s22 = int_to_ptr.hbm [resolvable:$true] %s277_s22 }
  0x12   : > { %p1467_p9 = pneg %p1908_p8  ;;  %s2198_s24 = smov 4  }
  0x13   : > { %s1812_s25 = smov [#allocation8]   ;;  %s2206_s3 = sld [smem:[#allocation17_spill]] }
  0x14   : > { %p1916_p10 = pnand %p1467_p9, %p47_p1  ;;  %s279_s26 = sshll.u32 %s1812_s25, 4  ;;  %s280_s26 = int_to_ptr.vmem [resolvable:$true] %s279_s26 }
  0x15   : > { %s246_s15 = sshll.u32 %s2203_s2, 4  ;;  %s292_s21 = sshll.u32 %s2194_s6, 4  ;;  %s247_s15 = int_to_ptr.hbm [resolvable:$true] %s246_s15  ;;  %s293_s21 = int_to_ptr.hbm [resolvable:$true] %s292_s21 }
  0x16   : > { %1470 = dma.hbm_to_vmem [thread:$0]  (!%p1916_p10), %s247_s15, 512, %s249_s18, [#allocation6], %s2197_s23, %s2197_s23, %s2198_s24  }
  0x17   : > { %1476 = dma.hbm_to_vmem [thread:$0]  (!%p1916_p10), %s278_s22, 1024, %s280_s26, [#allocation9], %s2197_s23, %s2197_s23, %s2198_s24  }
  0x18   : > { %s1813_s15 = smov [#allocation7]   ;;  %s1814_s25 = smov 192  }
  0x19   : > { %s260_s14 = sshll.u32 %s2206_s3, 4  ;;  %s262_s17 = sshll.u32 %s1813_s15, 4  ;;  %s261_s14 = int_to_ptr.hbm [resolvable:$true] %s260_s14  ;;  %s263_s17 = int_to_ptr.vmem [resolvable:$true] %s262_s17 }
  0x1a   : > { %s1815_s10 = smov 12   ;;  %s1816_s22 = smov [#allocation10]  }
  0x1b   : > { %1473 = dma.hbm_to_vmem [thread:$0]  (!%p1916_p10), %s261_s14, 1536, %s263_s17, [#allocation6], %s1814_s25, %s1814_s25, %s1815_s10  }
  0x1c   : > { %s294_s26 = sshll.u32 %s1816_s22, 4  ;;  %s1945_s13 = sadd.s32 1, %s1807_s30   ;;  %s295_s26 = int_to_ptr.vmem [resolvable:$true] %s294_s26 }
  0x1d   : > { %1479 = dma.hbm_to_vmem [thread:$0]  (!%p1916_p10), %s293_s21, 96, %s295_s26, [#allocation9]  }
  0x1e   : > { %s33_s15 = sadd.s32 1, %s1803_s29  ;;  %s30_s18 = ssub.s32 %s1807_s30, %s1945_s13 }
  0x1f   : > { %p40_p12 = scmp.ne.s32.totalorder %s1803_s29, %s1799_s28  ;;  %p31_p13 = scmp.eq.s32.totalorder %s30_s18, 0 }
  0x20   : > { %p41_p0 = scmp.eq.s32.totalorder %s1807_s30, 0  ;;  %p1492_p5 = scmp.lt.s32.totalorder %s1807_s30, 2 }
  0x21   : > { %p1955_p3 = por %p222_p2, %p40_p12  ;;  %s308_s17 = sand.u32 1, %s1803_s29  }
  0x22   : > { %s1961_s14 = scalar_select %p31_p13, %s1803_s29, %s33_s15  }
  0x23   : > { %p42_p7 = por %p41_p0, %p40_p12  ;;  %s1233_s19 = sshll.u32 %s308_s17, 4 }
  0x24   : > { %s1400_s21 = sshll.u32 %s1807_s30, 4  ;;  %s312_s26 = scalar_lea.vmem [#allocation2], %s1233_s19 }
  0x25   : > { %s317_s22 = scalar_lea.hbm %s2188_s0, %s1400_s21  ;;  %s320_s23 = sshll.u32 %s312_s26, 4  ;;  %s321_s23 = int_to_ptr.vmem [resolvable:$true] %s320_s23 }
  0x26   : > { %s318_s18 = sshll.u32 %s317_s22, 4  ;;  %p1968_p2 = pnand %p1492_p5, %p42_p7  ;;  %s319_s18 = int_to_ptr.hbm [resolvable:$true] %s318_s18 }
  0x27   : > { %s309_s15 = scalar_lea.sflag [#allocation3], %s308_s17  ;;  %s1703_s2 = sshra.s32 %s319_s18, 4  ;;  %s1704_s2 = int_to_ptr.hbm [resolvable:$true] %s1703_s2 }
  0x28   : > { %s1705_s3 = scalar_lea.hbm %s1704_s2, 16  ;;  %p1707_p10 = pneg %p1968_p2 }
  0x29   : > { %p1706_p9 = scmp.ne.s32.totalorder %s1704_s2, %s1705_s3  ;;  %s1710_s25 = scalar_lea.hbm %s2188_s0, 32 }
  0x2a   : > { %p1711_p0 = scmp.lt.s32.totalorder %s1704_s2, %s2188_s0  ;;  %p1712_p5 = scmp.lt.s32.totalorder %s1710_s25, %s1705_s3 }
  0x2b   : > { %p1708_p12 = pnand %p1707_p10, %p1706_p9 }
  0x2c   : > { %p1713_p7 = por %p1712_p5, %p1711_p0 }
  0x2d   : > { %p1709_p13 = pneg %p1708_p12 }
  0x2f   : > { %p1714_p11 = pnand %p1713_p7, %p1709_p13 }
  0x31   : > { %1717 = shalt.err (!%p1714_p11)
}
  0x32   : > { %s2209_s17 = smov 4   ;;  %s2210_s26 = smov 64  }
  0x33   : > { %1483 = dma.hbm_to_vmem [thread:$0]  (!%p1968_p2), %s319_s18, 256, %s321_s23, %s309_s15, %s2210_s26, %s2210_s26, %s2209_s17  }
  0x34   : > { %341 = sbr.rel (%p1908_p8) target bundleno = 839 (0x347), region = 52  ;;  %s1988_s21 = sand.u32 (!%p1908_p8), 1, %s1799_s28  }
  0x35   : > { %s1237_s2 = sshll.u32 (!%p1908_p8), %s1988_s21, 4  ;;  %s344_s3 = scalar_lea.sflag (!%p1908_p8), [#allocation3], %s1988_s21 }
  0x36   : > { %s1994_s19 = scalar_lea.vmem (!%p1908_p8), [#allocation2], %s1237_s2 }
  0x39   : > { %1778 = dma.done.wait (%p1895_p4), %s344_s3, 256  }
  0x3a   : > { %1780 = vsyncadd (%p1895_p4), %s344_s3, 4294967040 }
  0x3b   : > { %1782 = dma.done.wait (%p47_p1), [#allocation6], 2048  }
  0x3c   : > { %1784 = vsyncadd (%p47_p1), [#allocation6], 4294965248 }
  0x3d   : > { %1786 = dma.done.wait (%p47_p1), [#allocation9], 1120  }
  0x3e   : > { %1788 = vsyncadd (%p47_p1), [#allocation9], 4294966176  ;;  %v1408_v0 = vld [vmem:[#allocation5 + $0x18] sm:$0xff]  ;;  %v1309_v1 = vld [vmem:[#allocation7 + $0x48] sm:$0xf]  ;;  %vm468_vm0 = vcmask 523264  }
  0x3f   : > { %v1419_v2 = vld [vmem:[#allocation7 + $0x50] sm:$0xf0]  ;;  %v1297_v4 = vld [vmem:[#allocation7 + $0x30] sm:$0xf]  ;;  %v1416_v5 = vld [vmem:[#allocation7 + $0x38] sm:$0xf0]  ;;  %479 = vmatpush.bf16.msra.mxu0 %v1408_v0 }
  0x40   : > { %v1310_v3 = vor.u32 %v1419_v2, %v1309_v1  ;;  %v1407_v6 = vld [vmem:[#allocation5 + $0x10] sm:$0xff]  ;;  %v1298_v7 = vor.u32 %v1416_v5, %v1297_v4  ;;  %v1285_v8 = vld [vmem:[#allocation7 + $0x18] sm:$0xf]  ;;  %v1413_v9 = vld [vmem:[#allocation7 + $0x20] sm:$0xf0]  ;;  %s1243_s18 = sshll.u32 %s1886_s9, 2 }
  0x41   : > { %v1406_v10 = vld [vmem:[#allocation5 + $0x8] sm:$0xff]  ;;  %v1311_v12 = vld [vmem:[#allocation7 + $0x54] sm:$0xf0]  ;;  %v1415_v13 = vld [vmem:[#allocation7 + $0x34] sm:$0xf]  ;;  %v1286_v15 = vor.u32 %v1413_v9, %v1285_v8  ;;  %p408_p1 = scmp.lt.s32.totalorder %s1243_s18, 7 }
  0x42   : > { %588 = vmatpush.bf16.msra.mxu1 %v1310_v3  ;;  %v1418_v11 = vld [vmem:[#allocation7 + $0x4c] sm:$0xf]  ;;  %v1299_v14 = vld [vmem:[#allocation7 + $0x3c] sm:$0xf0]  ;;  %v1347_v19 = vld [vmem:[%s2192_s4 + $0x18] sm:$0xf] }
  0x43   : > { %480 = vmatpush.bf16.msra.mxu0 %v1407_v6  ;;  %v1273_v16 = vld [vmem:[#allocation7] sm:$0xf]  ;;  %v1314_v17 = vor.u32 %v1418_v11, %v1311_v12  ;;  %v1410_v18 = vld [vmem:[#allocation7 + $0x8] sm:$0xf0]  ;;  %v1425_v20 = vld [vmem:[%s2192_s4 + $0x20] sm:$0xf0]  ;;  %v1302_v23 = vor.u32 %v1415_v13, %v1299_v14 }
  0x44   : > { %v1424_v21 = vld [vmem:[%s2192_s4 + $0x1c] sm:$0xf]  ;;  %v1349_v22 = vld [vmem:[%s2192_s4 + $0x24] sm:$0xf0]  ;;  %v1405_v24 = vld [vmem:[#allocation5] sm:$0xff]  ;;  %v1274_v27 = vor.u32 %v1410_v18, %v1273_v16  ;;  %v1348_v28 = vor.u32 %v1425_v20, %v1347_v19  ;;  %s2217_s18 = smov (!%p408_p1, %s1243_s18), 7 }
  0x45   : > { %607 = vmatpush.bf16.msra.mxu2 %v1314_v17  ;;  %v1412_v25 = vld [vmem:[#allocation7 + $0x1c] sm:$0xf]  ;;  %v1287_v26 = vld [vmem:[#allocation7 + $0x24] sm:$0xf0]  ;;  %v1352_v29 = vor.u32 %v1424_v21, %v1349_v22  ;;  %v1335_v30 = vld [vmem:[%s2192_s4] sm:$0xf] }
  0x46   : > { %589 = vmatpush.bf16.msra.mxu1 %v1298_v7  ;;  %v1422_v31 = vld [vmem:[%s2192_s4 + $0x8] sm:$0xf0]  ;;  %v2027_v32 = vld [vmem:[%s1994_s19] sm:$0xff]  ;;  %v1290_v33 = vor.u32 %v1412_v25, %v1287_v26  ;;  %s1244_s15 = sshll.u32 %s2217_s18, 2  ;;  %vm700_vm1 = vcmask 261120   ;;  %s405_s25 = scalar_lea.vmem [#allocation11], %s1237_s2 }
  0x47   : > { %481 = vmatpush.bf16.msra.mxu0 %v1406_v10  ;;  %v1421_v34 = vld [vmem:[%s2192_s4 + $0x4] sm:$0xf]  ;;  %v1337_v35 = vld [vmem:[%s2192_s4 + $0xc] sm:$0xf0]  ;;  %v1336_v38 = vor.u32 %v1422_v31, %v1335_v30  ;;  %v1402_v41 = vld [vmem:[%s1994_s19 + $0x8] sm:$0xff]  ;;  %s411_s22 = scalar_lea.vmem %s2189_s1, %s1244_s15  ;;  %s1435_s10 = sshll.u32 %s1886_s9, 4 }
  0x48   : > { %v1409_v36 = vld [vmem:[#allocation7 + $0x4] sm:$0xf]  ;;  %v1275_v37 = vld [vmem:[#allocation7 + $0xc] sm:$0xf0]  ;;  %v1340_v39 = vor.u32 %v1421_v34, %v1337_v35  ;;  %v1404_v43 = vld [vmem:[%s411_s22 + $0x8] sm:$0xff]  ;;  %s1099_s17 = scalar_lea.hbm %s2196_s8, %s1435_s10  ;;  %s1100_s2 = sshll.u32 %s405_s25, 4  ;;  %s1101_s2 = int_to_ptr.vmem [resolvable:$true] %s1100_s2 }
  0x49   : > { %608 = vmatpush.bf16.msra.mxu2 %v1302_v23  ;;  %v1278_v40 = vor.u32 %v1409_v36, %v1275_v37  ;;  %v1403_v42 = vld [vmem:[%s411_s22] sm:$0xff]  ;;  %v1426_v45 = vld [vmem:[%s2192_s4 + $0x28] sm:$0xf0]  ;;  %v1317_v47 = vld [vmem:[#allocation7 + $0x50] sm:$0xf]  ;;  %s1102_s26 = sshll.u32 %s1099_s17, 4  ;;  %s1103_s26 = int_to_ptr.hbm [resolvable:$true] %s1102_s26 }
  0x4a   : > { %590 = vmatpush.bf16.msra.mxu1 %v1286_v15  ;;  %v1355_v44 = vld [vmem:[%s2192_s4 + $0x20] sm:$0xf]  ;;  %v1420_v48 = vld [vmem:[#allocation7 + $0x58] sm:$0xf0]  ;;  %v1305_v50 = vld [vmem:[#allocation7 + $0x38] sm:$0xf] }
  0x4b   : > { %482 = vmatpush.bf16.msra.mxu0 %v1405_v24  ;;  %v1356_v46 = vor.u32 %v1426_v45, %v1355_v44  ;;  %v1318_v49 = vor.u32 %v1420_v48, %v1317_v47  ;;  %v1417_v51 = vld [vmem:[#allocation7 + $0x40] sm:$0xf0]  ;;  %v1293_v53 = vld [vmem:[#allocation7 + $0x20] sm:$0xf]  ;;  %v1414_v54 = vld [vmem:[#allocation7 + $0x28] sm:$0xf0] }
  0x4c   : > { %v1306_v52 = vor.u32 %v1417_v51, %v1305_v50  ;;  %v1294_v56 = vor.u32 %v1414_v54, %v1293_v53  ;;  %v1343_v58 = vld [vmem:[%s2192_s4 + $0x8] sm:$0xf]  ;;  %v1423_v59 = vld [vmem:[%s2192_s4 + $0x10] sm:$0xf0]  ;;  %v2074_v4 = vld [vmem:[#allocation10] sm:$0x3f] }
  0x4d   : > { %609 = vmatpush.bf16.msra.mxu2 %v1290_v33  ;;  %626 = vmatpush.bf16.msra.mxu3 %v1318_v49  ;;  %v1281_v60 = vld [vmem:[#allocation7 + $0x8] sm:$0xf]  ;;  %v1344_v61 = vor.u32 %v1423_v59, %v1343_v58  ;;  %v1411_v62 = vld [vmem:[#allocation7 + $0x10] sm:$0xf0]  ;;  %v512_v6 = vperm.slane %v2074_v4, 2  ;;  %v649_v9 = vperm.slane %v2074_v4, 1 }
  0x4e   : > { %591 = vmatpush.bf16.msra.mxu1 %v1274_v27  ;;  %1269 = vmatmul.msk.bf16.vlgmr.msra.gmra.mxu0 %vm468_vm0, %v2027_v32  ;;  %v1282_v63 = vor.u32 %v1411_v62, %v1281_v60  ;;  %v650_v10 = vperm.slane %v2074_v4, 3  ;;  %v511_v11 = vperm.slane %v2074_v4, 0  ;;  %v1432_v58 = vld [vmem:[#allocation8 + $0x28] sm:$0xff]  ;;  %v1431_v59 = vld [vmem:[#allocation8 + $0x20] sm:$0xff]  ;;  %v1430_v60 = vld [vmem:[#allocation8 + $0x18] sm:$0xff]  ;;  %s1088_s9 = scalar_lea.sflag [#allocation4], %s1988_s21 }
  0x4f   : > { %713 = vmatpush.bf16.msrb.mxu0 %v1348_v28  ;;  %v518_v12 = vperm.slane %v512_v6, 0  ;;  %v655_v13 = vperm.slane %v649_v9, 1  ;;  %s1747_s3 = sshra.s32 %s1103_s26, 4  ;;  %s1753_s24 = scalar_lea.hbm %s2196_s8, 32  ;;  %s1748_s3 = int_to_ptr.hbm [resolvable:$true] %s1747_s3 }
  0x50   : > { %v656_v14 = vperm.slane %v650_v10, 1  ;;  %v517_v15 = vperm.slane %v511_v11, 0  ;;  %v1428_v10 = vld [vmem:[#allocation8 + $0x8] sm:$0xff]  ;;  %s1749_s11 = scalar_lea.hbm %s1748_s3, 16  ;;  %p1754_p2 = scmp.lt.s32.totalorder %s1748_s3, %s2196_s8 }
  0x51   : > { %1319 = vmatmul.msk.bf16.vlgmr.msra.gmra.mxu1 %vm468_vm0, %v2027_v32  ;;  %610 = vmatpush.bf16.msra.mxu2 %v1278_v40  ;;  %p1750_p4 = scmp.ne.s32.totalorder %s1748_s3, %s1749_s11  ;;  %p1755_p9 = scmp.lt.s32.totalorder %s1753_s24, %s1749_s11 }
  0x52   : > { %732 = vmatpush.bf16.msrb.mxu1 %v1352_v29  ;;  %627 = vmatpush.bf16.msra.mxu3 %v1306_v52 }
  0x53   : > { %714 = vmatpush.bf16.msrb.mxu0 %v1336_v38  ;;  %p1751_p8 = pnand %p1750_p4, %p1955_p3  ;;  %p1756_p10 = por %p1755_p9, %p1754_p2 }
  0x54   : > { %1321 = vmatmul.msk.bf16.vlgmr.msra.gmra.mxu2 %vm468_vm0, %v2027_v32 }
  0x55   : > { %751 = vmatpush.bf16.msrb.mxu2 %v1356_v46  ;;  %p1752_p11 = pneg %p1751_p8 }
  0x56   : > { %733 = vmatpush.bf16.msrb.mxu1 %v1340_v39  ;;  %628 = vmatpush.bf16.msra.mxu3 %v1294_v56  ;;  %v1434_v56 = vld [vmem:[#allocation8 + $0x38] sm:$0xff] }
  0x57   : > { %p1757_p12 = pnand %p1756_p10, %p1752_p11 }
  0x59   : > { %752 = vmatpush.bf16.msrb.mxu2 %v1344_v61 }
  0x5a   : > { %629 = vmatpush.bf16.msra.mxu3 %v1282_v63 }
  0x5d   : > { %1323 = vmatmul.msk.bf16.vlgmr.msra.gmra.mxu3 %vm468_vm0, %v2027_v32 }
  0x5e   : > { %1270 = vmatmul.msk.bf16.gmra.mxu0 %vm468_vm0, %v1402_v41  ;;  %959 = vmatpush.bf16.msrb.mxu3 %v1434_v56 }
  0x61   : > { %1320 = vmatmul.msk.bf16.gmra.mxu1 %vm468_vm0, %v1402_v41 }
  0x64   : > { %1322 = vmatmul.msk.bf16.gmra.mxu2 %vm468_vm0, %v1402_v41 }
  0x6d   : > { %1324 = vmatmul.msk.bf16.gmra.mxu3 %vm468_vm0, %v1402_v41 }
  0x6e   : > { %1357 = vmatmul.msk.bf16.vlgmr.msrb.gmra.mxu0 %vm700_vm1, %v1403_v42 }
  0x71   : > { %1359 = vmatmul.msk.bf16.vlgmr.msrb.gmra.mxu1 %vm700_vm1, %v1403_v42 }
  0x74   : > { %1361 = vmatmul.msk.bf16.vlgmr.msrb.gmra.mxu2 %vm700_vm1, %v1403_v42 }
  0x7e   : > { %1358 = vmatmul.msk.bf16.gmra.mxu0 %vm700_vm1, %v1404_v43 }
  0x81   : > { %1360 = vmatmul.msk.bf16.gmra.mxu1 %vm700_vm1, %v1404_v43 }
  0x84   : > { %1362 = vmatmul.msk.bf16.gmra.mxu2 %vm700_vm1, %v1404_v43 }
  0xcb   : > { %v2059_v55 = vpop.f32.mrf.mxu0 }
  0xce   : > { %v593_v57 = vpop.f32.mrf.mxu1 }
  0xcf   : > { %v594_v22 = vadd.f32 %v593_v57, %v517_v15  ;;  %v1433_v57 = vld [vmem:[#allocation8 + $0x30] sm:$0xff] }
  0xd0   : > { %960 = vmatpush.bf16.msrb.mxu3 %v1433_v57 }
  0xd3   : > { %v2067_v0 = vpop.f32.mrf.mxu0 }
  0xd4   : > { %961 = vmatpush.bf16.msrb.mxu3 %v1432_v58 }
  0xd6   : > { %v595_v1 = vpop.f32.mrf.mxu1 }
  0xd7   : > { %v612_v8 = vpop.f32.mrf.mxu2  ;;  %v596_v30 = vadd.f32 %v595_v1, %v517_v15 }
  0xd8   : > { %v613_v16 = vadd.f32 %v612_v8, %v518_v12  ;;  %962 = vmatpush.bf16.msrb.mxu3 %v1431_v59 }
  0xdb   : > { %v2072_v2 = vpop.f32.mrf.mxu0 }
  0xdc   : > { %963 = vmatpush.bf16.msrb.mxu3 %v1430_v60 }
  0xde   : > { %v598_v3 = vpop.f32.mrf.mxu1 }
  0xdf   : > { %v614_v21 = vpop.f32.mrf.mxu2  ;;  %v599_v41 = vadd.f32 %v598_v3, %v517_v15  ;;  %v1429_v3 = vld [vmem:[#allocation8 + $0x10] sm:$0xff] }
  0xe0   : > { %v615_v28 = vadd.f32 %v614_v21, %v518_v12  ;;  %964 = vmatpush.bf16.msrb.mxu3 %v1429_v3 }
  0xe3   : > { %v2076_v5 = vpop.f32.mrf.mxu0 }
  0xe4   : > { %965 = vmatpush.bf16.msrb.mxu3 %v1428_v10 }
  0xe6   : > { %v600_v7 = vpop.f32.mrf.mxu1 }
  0xe7   : > { %v617_v33 = vpop.f32.mrf.mxu2  ;;  %v601_v50 = vadd.f32 %v600_v7, %v517_v15 }
  0xe8   : > { %v618_v36 = vadd.f32 %v617_v33, %v518_v12 }
  0xeb   : > { %v716_v17 = vpop.f32.mrf.mxu0 }
  0xec   : > { %v717_v19 = vadd.f32 %v716_v17, %v655_v13  ;;  %v1427_v17 = vld [vmem:[#allocation8] sm:$0xff] }
  0xed   : > { %966 = vmatpush.bf16.msrb.mxu3 %v1427_v17 }
  0xee   : > { %v735_v18 = vpop.f32.mrf.mxu1 }
  0xef   : > { %v736_v20 = vadd.f32 %v735_v18, %v656_v14  ;;  %v619_v45 = vpop.f32.mrf.mxu2 }
  0xf0   : > { %v620_v48 = vadd.f32 %v619_v45, %v518_v12 }
  0xf1   : > { %v764_v23 = vsub.f32 %v613_v16, %v736_v20 }
  0xf3   : > { %v768_v24 = vmul.f32 %v764_v23, %v594_v22  ;;  %v784_v25 = vmul.f32 %v764_v23, %v717_v19  ;;  %v718_v26 = vpop.f32.mrf.mxu0 }
  0xf4   : > { %v719_v31 = vadd.f32 %v718_v26, %v655_v13 }
  0xf5   : > { %772 = vadd.xlane.f32.xlu0 %v768_v24  ;;  %788 = vadd.xlane.f32.xlu1 %v784_v25  ;;  %v631_v24 = vpop.f32.mrf.mxu3 }
  0xf6   : > { %v737_v27 = vpop.f32.mrf.mxu1 }
  0xf7   : > { %v738_v29 = vadd.f32 %v737_v27, %v656_v14  ;;  %v754_v33 = vpop.f32.mrf.mxu2 }
  0xf9   : > { %v765_v32 = vsub.f32 %v615_v28, %v738_v29 }
  0xfb   : > { %v769_v34 = vmul.f32 %v765_v32, %v596_v30  ;;  %v785_v35 = vmul.f32 %v765_v32, %v719_v31  ;;  %v721_v37 = vpop.f32.mrf.mxu0 }
  0xfc   : > { %v722_v39 = vadd.f32 %v721_v37, %v655_v13 }
  0xfd   : > { %774 = vadd.xlane.f32.xlu0 %v769_v34  ;;  %790 = vadd.xlane.f32.xlu1 %v785_v35 }
  0xfe   : > { %v740_v38 = vpop.f32.mrf.mxu1 }
  0xff   : > { %v741_v40 = vadd.f32 %v740_v38, %v656_v14  ;;  %v513_v38 = vperm.slane %v2074_v4, 4  ;;  %v756_v56 = vpop.f32.mrf.mxu2 }
 0x101   : > { %v766_v42 = vsub.f32 %v618_v36, %v741_v40 }
 0x103   : > { %v770_v43 = vmul.f32 %v766_v42, %v599_v41  ;;  %v786_v44 = vmul.f32 %v766_v42, %v722_v39  ;;  %v723_v46 = vpop.f32.mrf.mxu0  ;;  %v651_v42 = vperm.slane %v2074_v4, 5 }
 0x104   : > { %v724_v51 = vadd.f32 %v723_v46, %v655_v13 }
 0x105   : > { %776 = vadd.xlane.f32.xlu2 %v770_v43  ;;  %792 = vadd.xlane.f32.xlu0 %v786_v44 }
 0x106   : > { %v742_v47 = vpop.f32.mrf.mxu1 }
 0x107   : > { %v743_v49 = vadd.f32 %v742_v47, %v656_v14 }
 0x109   : > { %v767_v52 = vsub.f32 %v620_v48, %v743_v49 }
 0x10b   : > { %v771_v53 = vmul.f32 %v767_v52, %v601_v50  ;;  %v787_v54 = vmul.f32 %v767_v52, %v724_v51  ;;  %v2108_v51 = vperm.slane %v513_v38, 0  ;;  %v633_v52 = vpop.f32.mrf.mxu3 }
 0x10d   : > { %778 = vadd.xlane.f32.xlu2 %v771_v53  ;;  %794 = vadd.xlane.f32.xlu1 %v787_v54  ;;  %v2110_v54 = vperm.slane %v651_v42, 1 }
 0x168   : > { %v773_v61 = vpop.xlane.xlu0 %772  ;;  %v789_v62 = vpop.xlane.xlu1 %788 }
 0x169   : > { %v2084_v63 = vmul.f32 0.088388346, %v773_v61  ;;  %v2086_v1 = vmul.f32 0.088388346, %v789_v62  ;;  %v632_v61 = vadd.f32 %v631_v24, %v2108_v51  ;;  %v759_v24 = vpop.f32.mrf.mxu2 }
 0x16b   : > { %v800_v6 = vand.u32 2147483647, %v2084_v63  ;;  %v836_v7 = vand.u32 2147483647, %v2086_v1  ;;  %vm824_vm2 = vcmp.ge.f32.partialorder %v2084_v63, 0.0  ;;  %vm860_vm3 = vcmp.ge.f32.partialorder %v2086_v1, 0.0 }
 0x16d   : > { %v804_v8 = vsub.f32 0.0, %v800_v6  ;;  %v840_v9 = vsub.f32 0.0, %v836_v7  ;;  %v755_v6 = vadd.f32 %v754_v33, %v2110_v54 }
 0x16f   : > { %v808_v11 = vmul.f32 1.442695, %v804_v8  ;;  %v844_v12 = vmul.f32 1.442695, %v840_v9  ;;  %v880_v1 = vsub.f32 %v632_v61, %v755_v6 }
 0x170   : > { %v775_v13 = vpop.xlane.xlu0 %774  ;;  %v791_v14 = vpop.xlane.xlu1 %790 }
 0x171   : > { %1541 = vpow2.f32 %v808_v11  ;;  %v2090_v15 = vmul.f32 0.088388346, %v775_v13  ;;  %v2092_v16 = vmul.f32 0.088388346, %v791_v14 }
 0x172   : > { %1543 = vpow2.f32 %v844_v12 }
 0x173   : > { %v801_v18 = vand.u32 2147483647, %v2090_v15  ;;  %v837_v19 = vand.u32 2147483647, %v2092_v16  ;;  %vm825_vm4 = vcmp.ge.f32.partialorder %v2090_v15, 0.0  ;;  %vm861_vm5 = vcmp.ge.f32.partialorder %v2092_v16, 0.0 }
 0x175   : > { %v805_v20 = vsub.f32 0.0, %v801_v18  ;;  %v841_v21 = vsub.f32 0.0, %v837_v19  ;;  %v634_v18 = vadd.f32 %v633_v52, %v2108_v51  ;;  %v757_v19 = vadd.f32 %v756_v56, %v2110_v54 }
 0x177   : > { %v1542_v22 = vpop.eup %1541  ;;  %v810_v23 = vmul.f32 1.442695, %v805_v20  ;;  %v846_v27 = vmul.f32 1.442695, %v841_v21 }
 0x178   : > { %v1544_v25 = vpop.eup %1543  ;;  %v816_v26 = vadd.f32 1.0, %v1542_v22  ;;  %v777_v28 = vpop.xlane.xlu2 %776 }
 0x179   : > { %v793_v29 = vpop.xlane.xlu0 %792  ;;  %v852_v30 = vadd.f32 1.0, %v1544_v25  ;;  %1545 = vpow2.f32 %v810_v23  ;;  %v2096_v31 = vmul.f32 0.088388346, %v777_v28  ;;  %v636_v23 = vpop.f32.mrf.mxu3 }
 0x17a   : > { %v2098_v32 = vmul.f32 0.088388346, %v793_v29  ;;  %1547 = vrcp.f32 %v816_v26  ;;  %v881_v29 = vsub.f32 %v634_v18, %v757_v19 }
 0x17b   : > { %1549 = vrcp.f32 %v852_v30  ;;  %v802_v34 = vand.u32 2147483647, %v2096_v31  ;;  %vm826_vm6 = vcmp.ge.f32.partialorder %v2096_v31, 0.0 }
 0x17c   : > { %v838_v35 = vand.u32 2147483647, %v2098_v32  ;;  %1551 = vpow2.f32 %v846_v27  ;;  %vm862_vm7 = vcmp.ge.f32.partialorder %v2098_v32, 0.0 }
 0x17d   : > { %v806_v36 = vsub.f32 0.0, %v802_v34 }
 0x17e   : > { %v842_v37 = vsub.f32 0.0, %v838_v35  ;;  %v876_v35 = vmul.f32 2.0, %v755_v6 }
 0x17f   : > { %v1546_v39 = vpop.eup %1545  ;;  %v812_v40 = vmul.f32 1.442695, %v806_v36  ;;  %v877_v36 = vmul.f32 2.0, %v757_v19 }
 0x180   : > { %v848_v41 = vmul.f32 1.442695, %v842_v37  ;;  %v1548_v43 = vpop.eup %1547  ;;  %v817_v44 = vadd.f32 1.0, %v1546_v39  ;;  %v779_v45 = vpop.xlane.xlu2 %778 }
 0x181   : > { %v795_v46 = vpop.xlane.xlu1 %794  ;;  %v1550_v47 = vpop.eup %1549  ;;  %1553 = vpow2.f32 %v812_v40  ;;  %v2104_v48 = vmul.f32 0.088388346, %v779_v45  ;;  %v828_v57 = vmul.f32 %v1548_v43, %v1542_v22 }
 0x182   : > { %v2106_v49 = vmul.f32 0.088388346, %v795_v46  ;;  %v1552_v50 = vpop.eup %1551  ;;  %1555 = vrcp.f32 %v817_v44  ;;  %v864_v58 = vmul.f32 %v1550_v47, %v1544_v25  ;;  %v760_v44 = vadd.f32 %v759_v24, %v2110_v54  ;;  %v638_v45 = vpop.f32.mrf.mxu3 }
 0x183   : > { %v853_v53 = vadd.f32 1.0, %v1552_v50  ;;  %1557 = vpow2.f32 %v848_v41  ;;  %v803_v4 = vand.u32 2147483647, %v2104_v48  ;;  %v832_v9 = vsel %vm824_vm2, %v1548_v43, %v828_v57 }
 0x184   : > { %v839_v59 = vand.u32 2147483647, %v2106_v49  ;;  %v868_v10 = vsel %vm860_vm3, %v1550_v47, %v864_v58  ;;  %v637_v43 = vadd.f32 %v636_v23, %v2108_v51  ;;  %vm827_vm8 = vcmp.ge.f32.partialorder %v2104_v48, 0.0  ;;  %v2133_v48 = vld [vmem:[%s2195_s7] sm:$0xf] }
 0x185   : > { %1559 = vrcp.f32 %v853_v53  ;;  %v807_v60 = vsub.f32 0.0, %v803_v4  ;;  %v872_v20 = vadd.f32 %v868_v10, %v832_v9  ;;  %v639_v4 = vadd.f32 %v638_v45, %v2108_v51 }
 0x186   : > { %v843_v62 = vsub.f32 0.0, %v839_v59  ;;  %v882_v31 = vsub.f32 %v637_v43, %v760_v44  ;;  %vm863_vm9 = vcmp.ge.f32.partialorder %v2106_v49, 0.0  ;;  %v878_v6 = vmul.f32 2.0, %v760_v44 }
 0x187   : > { %v1554_v3 = vpop.eup %1553  ;;  %v814_v7 = vmul.f32 1.442695, %v807_v60  ;;  %v884_v28 = vmul.f32 %v880_v1, %v872_v20  ;;  %v910_v49 = vperm.slane %v2133_v48, 1 }
 0x188   : > { %v1556_v8 = vpop.eup %1555  ;;  %v818_v11 = vadd.f32 1.0, %v1554_v3  ;;  %v850_v12 = vmul.f32 1.442695, %v843_v62 }
 0x189   : > { %v1558_v13 = vpop.eup %1557  ;;  %v829_v14 = vmul.f32 %v1556_v8, %v1546_v39  ;;  %1561 = vpow2.f32 %v814_v7  ;;  %v888_v41 = vadd.f32 %v884_v28, %v876_v35 }
 0x18a   : > { %1563 = vrcp.f32 %v818_v11  ;;  %v854_v17 = vadd.f32 1.0, %v1558_v13 }
 0x18b   : > { %v1560_v63 = vpop.eup %1559  ;;  %1565 = vpow2.f32 %v850_v12  ;;  %v833_v21 = vsel %vm825_vm4, %v1556_v8, %v829_v14 }
 0x18c   : > { %v865_v22 = vmul.f32 %v1560_v63, %v1552_v50  ;;  %1567 = vrcp.f32 %v854_v17  ;;  %v761_v50 = vpop.f32.mrf.mxu2 }
 0x18d   : > { %v762_v32 = vadd.f32 %v761_v50, %v2110_v54  ;;  %v433_v54 = vperm.slane %v2133_v48, 0 }
 0x18e   : > { %v869_v25 = vsel %vm861_vm5, %v1560_v63, %v865_v22 }
 0x18f   : > { %v1562_v26 = vpop.eup %1561  ;;  %v873_v27 = vadd.f32 %v869_v25, %v833_v21  ;;  %v879_v7 = vmul.f32 2.0, %v762_v32  ;;  %v485_v12 = vadd.f32 %v2059_v55, %v433_v54  ;;  %v487_v18 = vadd.f32 %v2067_v0, %v433_v54 }
 0x190   : > { %v1564_v30 = vpop.eup %1563  ;;  %v819_v33 = vadd.f32 1.0, %v1562_v26  ;;  %v490_v1 = vadd.f32 %v2072_v2, %v433_v54  ;;  %v492_v24 = vadd.f32 %v2076_v5, %v433_v54 }
 0x191   : > { %v1566_v34 = vpop.eup %1565  ;;  %v885_v15 = vmul.f32 %v881_v29, %v873_v27  ;;  %v830_v39 = vmul.f32 %v1564_v30, %v1554_v3  ;;  %v883_v3 = vsub.f32 %v639_v4, %v762_v32 }
 0x192   : > { %v1568_v37 = vpop.eup %1567  ;;  %1569 = vrcp.f32 %v819_v33  ;;  %v855_v38 = vadd.f32 1.0, %v1566_v34 }
 0x193   : > { %v866_v40 = vmul.f32 %v1568_v37, %v1558_v13  ;;  %v889_v42 = vadd.f32 %v885_v15, %v877_v36  ;;  %v834_v46 = vsel %vm826_vm6, %v1564_v30, %v830_v39 }
 0x194   : > { %1571 = vrcp.f32 %v855_v38 }
 0x195   : > { %v892_v16 = vpack.c.bf16 %v889_v42, %v888_v41  ;;  %v870_v47 = vsel %vm862_vm7, %v1568_v37, %v866_v40 }
 0x196   : > { %v874_v57 = vadd.f32 %v870_v47, %v834_v46 }
 0x197   : > { %967 = vmatmul.bf16.vlgmr.msrb.gmra.mxu3 %v892_v16 }
 0x198   : > { %v1570_v52 = vpop.eup %1569  ;;  %v886_v62 = vmul.f32 %v882_v31, %v874_v57 }
 0x199   : > { %v831_v53 = vmul.f32 %v1570_v52, %v1562_v26  ;;  %v1817_v26 = vmov 128.0  }
 0x19a   : > { %v1572_v56 = vpop.eup %1571  ;;  %v890_v9 = vadd.f32 %v886_v62, %v878_v6  ;;  %1573 = vrcp.f32 %v1817_v26 }
 0x19b   : > { %v835_v58 = vsel %vm827_vm8, %v1570_v52, %v831_v53  ;;  %v867_v59 = vmul.f32 %v1572_v56, %v1566_v34 }
 0x19d   : > { %v871_v60 = vsel %vm863_vm9, %v1572_v56, %v867_v59 }
 0x19e   : > { %v875_v61 = vadd.f32 %v871_v60, %v835_v58 }
 0x1a0   : > { %v887_v8 = vmul.f32 %v883_v3, %v875_v61  ;;  %v1574_v27 = vpop.eup %1573 }
 0x1a1   : > { %v991_v28 = vmul.f32 128.0, %v1574_v27  ;;  %vm995_vm10 = vweird.f32 %v1574_v27 }
 0x1a2   : > { %v891_v51 = vadd.f32 %v887_v8, %v879_v7 }
 0x1a3   : > { %v992_v0 = vsub.f32 1.0, %v991_v28 }
 0x1a4   : > { %v893_v10 = vpack.c.bf16 %v891_v51, %v890_v9 }
 0x1a5   : > { %v993_v29 = vmul.f32 %v1574_v27, %v992_v0 }
 0x1a7   : > { %972 = vmatmul.bf16.gmra.mxu3 %v893_v10  ;;  %v994_v30 = vadd.f32 %v1574_v27, %v993_v29 }
 0x1a9   : > { %v996_v33 = vsel %vm995_vm10, %v1574_v27, %v994_v30 }
 0x21a   : > { %v968_v11 = vpop.f32.mrf.mxu3 }
 0x21b   : > { %v969_v13 = vadd.f32 %v968_v11, %v910_v49  ;;  %v1069_v11 = vperm.slane %v2133_v48, 2 }
 0x21d   : > { %v978_v14 = vadd.f32 %v969_v13, %v485_v12 }
 0x21f   : > { %982 = vadd.xlane.f32.xlu2 %v978_v14 }
 0x222   : > { %v970_v17 = vpop.f32.mrf.mxu3 }
 0x223   : > { %v971_v19 = vadd.f32 %v970_v17, %v910_v49 }
 0x225   : > { %v979_v63 = vadd.f32 %v971_v19, %v487_v18 }
 0x227   : > { %984 = vadd.xlane.f32.xlu0 %v979_v63 }
 0x22a   : > { %v973_v20 = vpop.f32.mrf.mxu3 }
 0x22b   : > { %v974_v21 = vadd.f32 %v973_v20, %v910_v49 }
 0x22d   : > { %v980_v22 = vadd.f32 %v974_v21, %v490_v1 }
 0x22f   : > { %986 = vadd.xlane.f32.xlu1 %v980_v22 }
 0x232   : > { %v975_v23 = vpop.f32.mrf.mxu3 }
 0x233   : > { %v976_v25 = vadd.f32 %v975_v23, %v910_v49 }
 0x235   : > { %v981_v55 = vadd.f32 %v976_v25, %v492_v24 }
 0x237   : > { %988 = vadd.xlane.f32.xlu2 %v981_v55 }
 0x292   : > { %v983_v34 = vpop.xlane.xlu2 %982 }
 0x293   : > { %v997_v2 = vmul.f32 %v996_v33, %v983_v34 }
 0x295   : > { %v1001_v35 = vsub.f32 %v978_v14, %v997_v2 }
 0x297   : > { %v1005_v36 = vmul.f32 %v1001_v35, %v1001_v35 }
 0x299   : > { %1009 = vadd.xlane.f32.xlu0 %v1005_v36 }
 0x29a   : > { %v985_v15 = vpop.xlane.xlu0 %984 }
 0x29b   : > { %v998_v37 = vmul.f32 %v996_v33, %v985_v15 }
 0x29d   : > { %v1002_v5 = vsub.f32 %v979_v63, %v998_v37  ;;  %v1074_v63 = vperm.slane %v2133_v48, 3 }
 0x29f   : > { %v1006_v38 = vmul.f32 %v1002_v5, %v1002_v5 }
 0x2a1   : > { %1011 = vadd.xlane.f32.xlu1 %v1006_v38 }
 0x2a2   : > { %v987_v39 = vpop.xlane.xlu1 %986 }
 0x2a3   : > { %v999_v40 = vmul.f32 %v996_v33, %v987_v39 }
 0x2a5   : > { %v2141_v41 = vsub.f32 %v980_v22, %v999_v40 }
 0x2a7   : > { %v1007_v42 = vmul.f32 %v2141_v41, %v2141_v41 }
 0x2a9   : > { %1013 = vadd.xlane.f32.xlu2 %v1007_v42 }
 0x2aa   : > { %v989_v16 = vpop.xlane.xlu2 %988 }
 0x2ab   : > { %v1000_v43 = vmul.f32 %v996_v33, %v989_v16 }
 0x2ad   : > { %v2145_v44 = vsub.f32 %v981_v55, %v1000_v43 }
 0x2af   : > { %v1008_v45 = vmul.f32 %v2145_v44, %v2145_v44 }
 0x2b1   : > { %1015 = vadd.xlane.f32.xlu0 %v1008_v45 }
 0x30c   : > { %v1010_v46 = vpop.xlane.xlu0 %1009 }
 0x30d   : > { %v1017_v47 = vmul.f32 %v1010_v46, %v996_v33 }
 0x30f   : > { %v1021_v50 = vadd.f32 1e-05, %v1017_v47 }
 0x311   : > { %1575 = vrsqrt.f32 %v1021_v50  ;;  %vm1031_vm12 = vweird.f32 %v1021_v50 }
 0x314   : > { %v1012_v52 = vpop.xlane.xlu1 %1011 }
 0x315   : > { %v1018_v53 = vmul.f32 %v1012_v52, %v996_v33 }
 0x317   : > { %v1576_v4 = vpop.eup %1575  ;;  %v1022_v56 = vadd.f32 1e-05, %v1018_v53 }
 0x318   : > { %v1026_v57 = vmul.f32 %v1576_v4, %v1021_v50  ;;  %vm1032_vm11 = vweird.f32 %v1576_v4 }
 0x319   : > { %1577 = vrsqrt.f32 %v1022_v56  ;;  %vm1033_vm13 = vmor %vm1031_vm12, %vm1032_vm11  ;;  %vm1041_vm15 = vweird.f32 %v1022_v56 }
 0x31a   : > { %v1027_v31 = vmul.f32 %v1576_v4, %v1026_v57 }
 0x31c   : > { %v1028_v32 = vmul.f32 0.5, %v1027_v31  ;;  %v1014_v58 = vpop.xlane.xlu2 %1013 }
 0x31d   : > { %v1019_v59 = vmul.f32 %v1014_v58, %v996_v33 }
 0x31e   : > { %v1029_v60 = vsub.f32 1.5, %v1028_v32 }
 0x31f   : > { %v1578_v61 = vpop.eup %1577  ;;  %v1023_v62 = vadd.f32 1e-05, %v1019_v59 }
 0x320   : > { %v1030_v3 = vmul.f32 %v1576_v4, %v1029_v60  ;;  %v1036_v6 = vmul.f32 %v1578_v61, %v1022_v56  ;;  %vm1042_vm14 = vweird.f32 %v1578_v61 }
 0x321   : > { %1579 = vrsqrt.f32 %v1023_v62  ;;  %vm1043_vm0 = vmor %vm1041_vm15, %vm1042_vm14  ;;  %vm1051_vm2 = vweird.f32 %v1023_v62 }
 0x322   : > { %v1037_v7 = vmul.f32 %v1578_v61, %v1036_v6  ;;  %v1034_v8 = vsel %vm1033_vm13, %v1576_v4, %v1030_v3 }
 0x323   : > { %v1065_v12 = vmul.f32 %v1034_v8, %v1001_v35 }
 0x324   : > { %v1038_v9 = vmul.f32 0.5, %v1037_v7  ;;  %v1016_v51 = vpop.xlane.xlu0 %1015 }
 0x325   : > { %v1020_v10 = vmul.f32 %v1016_v51, %v996_v33  ;;  %v1070_v20 = vmul.f32 %v1069_v11, %v1065_v12 }
 0x326   : > { %v1039_v54 = vsub.f32 1.5, %v1038_v9 }
 0x327   : > { %v1580_v49 = vpop.eup %1579  ;;  %v1024_v13 = vadd.f32 1e-05, %v1020_v10  ;;  %v1075_v25 = vadd.f32 %v1074_v63, %v1070_v20 }
 0x328   : > { %v1040_v14 = vmul.f32 %v1578_v61, %v1039_v54  ;;  %v1046_v17 = vmul.f32 %v1580_v49, %v1023_v62  ;;  %vm1052_vm1 = vweird.f32 %v1580_v49 }
 0x329   : > { %1581 = vrsqrt.f32 %v1024_v13  ;;  %vm1053_vm3 = vmor %vm1051_vm2, %vm1052_vm1  ;;  %vm1061_vm5 = vweird.f32 %v1024_v13 }
 0x32a   : > { %v1044_v18 = vsel %vm1043_vm0, %v1578_v61, %v1040_v14  ;;  %v1047_v19 = vmul.f32 %v1580_v49, %v1046_v17 }
 0x32b   : > { %v1066_v1 = vmul.f32 %v1044_v18, %v1002_v5 }
 0x32c   : > { %v1048_v21 = vmul.f32 0.5, %v1047_v19 }
 0x32d   : > { %v1071_v22 = vmul.f32 %v1069_v11, %v1066_v1 }
 0x32e   : > { %v1049_v23 = vsub.f32 1.5, %v1048_v21 }
 0x32f   : > { %v1582_v24 = vpop.eup %1581  ;;  %v1076_v55 = vadd.f32 %v1074_v63, %v1071_v22 }
 0x330   : > { %v1050_v26 = vmul.f32 %v1580_v49, %v1049_v23  ;;  %v1056_v27 = vmul.f32 %v1582_v24, %v1024_v13  ;;  %vm1062_vm4 = vweird.f32 %v1582_v24 }
 0x331   : > { %v1439_v28 = vpack.c.bf16 %v1076_v55, %v1075_v25  ;;  %vm1063_vm6 = vmor %vm1061_vm5, %vm1062_vm4 }
 0x332   : > { %v1057_v0 = vmul.f32 %v1582_v24, %v1056_v27  ;;  %v1054_v48 = vsel %vm1053_vm3, %v1580_v49, %v1050_v26 }
 0x333   : > { %1440 = vst [vmem:[%s405_s25] sm:$0xff] %v1439_v28   ;;  %v1067_v33 = vmul.f32 %v1054_v48, %v2141_v41 }
 0x334   : > { %v1058_v29 = vmul.f32 0.5, %v1057_v0 }
 0x335   : > { %v1072_v35 = vmul.f32 %v1069_v11, %v1067_v33 }
 0x336   : > { %v1059_v30 = vsub.f32 1.5, %v1058_v29 }
 0x337   : > { %v1077_v37 = vadd.f32 %v1074_v63, %v1072_v35 }
 0x338   : > { %v1060_v34 = vmul.f32 %v1582_v24, %v1059_v30 }
 0x33a   : > { %v1064_v2 = vsel %vm1063_vm6, %v1582_v24, %v1060_v34 }
 0x33b   : > { %v1068_v36 = vmul.f32 %v1064_v2, %v2145_v44 }
 0x33d   : > { %v1073_v15 = vmul.f32 %v1069_v11, %v1068_v36 }
 0x33f   : > { %v1078_v5 = vadd.f32 %v1074_v63, %v1073_v15 }
 0x341   : > { %v1444_v38 = vpack.c.bf16 %v1078_v5, %v1077_v37 }
 0x343   : > { %1446 = vst [vmem:[%s405_s25 + $0x8] sm:$0xff] %v1444_v38  }
 0x344   : > { %1760 = shalt.err (!%p1757_p12)
}
 0x345   : > { %s1818_s21 = smov 64   ;;  %s1819_s25 = smov 4  }
 0x346   : > { %1465 = dma.vmem_to_hbm [thread:$0]  (%p1955_p3), %s1101_s2, 256, %s1103_s26, %s1088_s9, %s1818_s21, %s1818_s21, %s1819_s25  }
 0x347 PF: > { %s1117_s10 = sand.u32 1, %s1795_s27   ;;  %p2211_p13 = scmp.ge.s32.totalorder %s1807_s30, 2 }
 0x348   : > { %s1118_s22 = scalar_lea.sflag [#allocation4], %s1117_s10 }
 0x349   : > { %p1485_p0 = pnand %p2211_p13, %p1900_p6 }
 0x34b   : > { %p1486_p5 = pneg %p1485_p0 }
 0x34d   : > { %1790 = dma.done.wait (%p1486_p5), %s1118_s22, 256  }
 0x34e   : > { %1792 = vsyncadd (%p1486_p5), %s1118_s22, 4294967040  ;;  %p23_p7 = scmp.ge.s32.totalorder %s1945_s13, 4   ;;  %s2212_s27 = smov %s1799_s28 }
 0x34f   : > { %s2213_s28 = smov %s1803_s29  ;;  %s2214_s29 = smov %s1961_s14 }
 0x350   : > { %s2215_s30 = smov %s1945_s13  ;;  %25 = sbr.rel (!%p23_p7) target bundleno = 10 (0xa), region = 116 }
 0x355   :  { %1124 = vsyncpa [#allocation3], 1 }
 0x356   :  { %1126 = vsyncpa [#allocation3 + $0x1], 1 }
 0x357   :  { %1127 = vsyncpa [#allocation6], 1 }
 0x358   :  { %1128 = vsyncpa [#allocation9], 1 }
 0x359   :  { %1129 = vsyncpa [#allocation4], 1 }
 0x35a   :  { %1131 = vsyncpa [#allocation4 + $0x1], 1 }

</bundles_post_ra>
